<compile_context>
chip_gen: v6e
topology: v6e:2x2x1
jax: 0.10.0
libtpu: 0.0.40
codegen_flags: <defaults>
</compile_context>

<pallas_src>
import functools

import jax
import jax.numpy as jnp
from jax import lax
from jax.experimental import pallas as pl
from jax.experimental.pallas import tpu as pltpu

LANES = 128                      # lane (minor) tile width
CHUNK_ROWS = 256                 # rows per inner-loop step (bounds temporaries)
VMEM_LIMIT_BYTES = 32 * 1024 * 1024


def _stable_bce(x, t):
    """Numerically stable BCE-with-logits (== torch.nn.BCEWithLogitsLoss)."""
    return jnp.maximum(x, 0.0) - x * t + jnp.log1p(jnp.exp(-jnp.abs(x)))


def _sublane_align(dtype) -> int:
    """Minimum sublane multiple for a non-full-dim block of this dtype."""
    bits = jnp.dtype(dtype).itemsize * 8
    return 8 if bits >= 32 else (8 * 32) // bits      # f32->8, bf16->16, int8->32


@functools.lru_cache(maxsize=None)
def _default_tiling():
    """Best-effort (max_rows_per_block, core_slices) for the local TPU generation."""
    try:
        kind = jax.devices()[0].device_kind.lower()
    except Exception:
        kind = ""
    if "v7" in kind or "7x" in kind:
        # v7x: ~3.2 TB/s HBM -> amortize per-step overhead harder, and split
        # the stream across its two TensorCores.
        return 8192, 2
    if "v4" in kind or ("v5" in kind and "lite" not in kind and "5e" not in kind):
        # Megacore chips (v4 / v5p): two TensorCores per device.
        return 4096, 2
    # v5e / v6e (single TensorCore) and anything unknown.
    return 4096, 1


def _make_kernel(rows_valid, row_block, chunk_rows, blocks_per_core):
    """Streaming partial-sum kernel over a (rows, 128) view of the inputs."""
    n_chunks = row_block // chunk_rows

    def fold(v):
        # (chunk_rows, 128) -> (8, 128): reduce over the major axis only, which
        # lowers to pure vreg-wise VALU adds (no cross-lane / sublane XLU work).
        return jnp.sum(v.reshape(chunk_rows // 8, 8, LANES), axis=0)

    def kernel(x_ref, t_ref, st_ref, sb_ref, stb_ref):
        c = pl.program_id(0)        # core slice (parallel)
        i = pl.program_id(1)        # block within the slice (reduction)

        @pl.when(i == 0)
        def _init():
            st_ref[...] = jnp.zeros_like(st_ref)
            sb_ref[...] = jnp.zeros_like(sb_ref)
            stb_ref[...] = jnp.zeros_like(stb_ref)

        # Logical start row of this block (row-based: int32-safe up to 2**31 rows).
        start_row = (c * blocks_per_core + i) * row_block

        def process(masked):
            @pl.loop(0, n_chunks)
            def _chunk(j):
                r0 = pl.multiple_of(j * chunk_rows, chunk_rows)
                xc = x_ref[pl.ds(r0, chunk_rows), :].astype(jnp.float32)
                tc = t_ref[pl.ds(r0, chunk_rows), :].astype(jnp.float32)
                if masked:
                    rid = (start_row + r0
                           + lax.broadcasted_iota(jnp.int32, (chunk_rows, LANES), 0))
                    valid = rid < rows_valid
                    # Mask BEFORE exp/log1p so stale VMEM rows of the partial
                    # block never produce Inf/NaN; bce(0,0)=log(2) is masked out.
                    xc = jnp.where(valid, xc, 0.0)
                    tc = jnp.where(valid, tc, 0.0)
                    bce = jnp.where(valid, _stable_bce(xc, tc), 0.0)
                else:
                    bce = _stable_bce(xc, tc)
                st_ref[0] += fold(tc)
                sb_ref[0] += fold(bce)
                stb_ref[0] += fold(tc * bce)

        is_full = start_row + row_block <= rows_valid
        in_range = start_row < rows_valid

        @pl.when(is_full)
        def _full_block():
            process(masked=False)

        @pl.when(jnp.logical_and(jnp.logical_not(is_full), in_range))
        def _partial_block():
            process(masked=True)
        # Fully out-of-range blocks (clamped duplicates from an uneven core
        # split) skip compute entirely.

    return kernel


@functools.partial(jax.jit, static_argnames=("max_rows", "cores"))
def negative_positive_balanced_bce_loss(output, target, *, max_rows=None, cores=None):
    x = output.reshape(-1)
    t = target.reshape(-1)

    # Bool / integer targets stream at 1 B/elem (cast to f32 in-kernel) instead
    # of a full f32 HBM copy; float targets keep their native dtype.
    if not jnp.issubdtype(t.dtype, jnp.floating):
        t = t.astype(jnp.int8)

    n = x.shape[0]
    total = jnp.float32(n)

    d_rows, d_cores = _default_tiling()
    max_rows = d_rows if max_rows is None else int(max_rows)
    ncores = d_cores if cores is None else int(cores)

    align = max(_sublane_align(x.dtype), _sublane_align(t.dtype))
    rows = n // LANES

    sum_t = jnp.float32(0.0)
    sum_bce = jnp.float32(0.0)
    sum_tbce = jnp.float32(0.0)
    n_kernel = 0

    if rows >= align:
        rb = min(max_rows, rows)
        if rb >= CHUNK_ROWS:
            row_block = (rb // CHUNK_ROWS) * CHUNK_ROWS
            chunk_rows = CHUNK_ROWS
        else:
            row_block = max(align, (rb // align) * align)
            chunk_rows = row_block
        num_blocks = -(-rows // row_block)
        ncores = max(1, min(ncores, num_blocks))
        blocks_per_core = -(-num_blocks // ncores)
        n_kernel = rows * LANES

        # Feed the 128-aligned prefix; the <128-element tail is summed in plain
        # JAX below (replaces the previous whole-array jnp.pad round trip).
        # TODO(synk): for ragged n the prefix slice may still materialize a copy;
        # a true zero-copy ragged path needs memory_space=pl.ANY + manual DMA.
        xs = x if n_kernel == n else x[:n_kernel]
        ts = t if n_kernel == n else t[:n_kernel]
        x2 = xs.reshape(rows, LANES)
        t2 = ts.reshape(rows, LANES)

        last_block = num_blocks - 1

        def in_map(c, i):
            # Clamp trailing (skipped) blocks of an uneven split back in range
            # so their DMA stays in-bounds; the kernel skips their compute.
            return (jnp.minimum(c * blocks_per_core + i, last_block), 0)

        in_spec = pl.BlockSpec((row_block, LANES), in_map)
        out_spec = pl.BlockSpec((1, 8, LANES), lambda c, i: (c, 0, 0))
        out_sds = jax.ShapeDtypeStruct((ncores, 8, LANES), jnp.float32)

        sums_t, sums_b, sums_tb = pl.pallas_call(
            _make_kernel(rows, row_block, chunk_rows, blocks_per_core),
            out_shape=(out_sds, out_sds, out_sds),
            grid=(ncores, blocks_per_core),
            in_specs=[in_spec, in_spec],
            out_specs=(out_spec, out_spec, out_spec),
            compiler_params=pltpu.CompilerParams(
                dimension_semantics=("parallel", "arbitrary"),
                vmem_limit_bytes=VMEM_LIMIT_BYTES),
        )(x2, t2)

        sum_t = jnp.sum(sums_t)
        sum_bce = jnp.sum(sums_b)
        sum_tbce = jnp.sum(sums_tb)

    if n_kernel < n:
        # Ragged tail (<128 elems) or tiny inputs: plain JAX on a static slice.
        xt = x[n_kernel:].astype(jnp.float32)
        tt = t[n_kernel:].astype(jnp.float32)
        bt = _stable_bce(xt, tt)
        sum_t = sum_t + jnp.sum(tt)
        sum_bce = sum_bce + jnp.sum(bt)
        sum_tbce = sum_tbce + jnp.sum(tt * bt)

    positive = sum_t
    negative = total - positive
    pos_w = jnp.clip(negative / jnp.clip(positive, 1.0, total), 1.0, total)
    neg_w = jnp.clip(positive / jnp.clip(negative, 1.0, total), 1.0, total)

    # mean((t*pw + (1-t)*nw)*bce) == (pw*sum(t*bce) + nw*(sum(bce)-sum(t*bce))) / N
    return (pos_w * sum_tbce + neg_w * (sum_bce - sum_tbce)) / total


def _reference_loss(output, target):
    """Plain-JAX reference mirroring the PyTorch module exactly."""
    x = output.reshape(-1).astype(jnp.float32)
    t = target.reshape(-1).astype(jnp.float32)
    not_t = 1.0 - t
    positive = t.sum()
    negative = not_t.sum()
    total = float(x.shape[0])
    pos_w = jnp.clip(negative / jnp.clip(positive, 1.0, total), 1.0, total)
    neg_w = jnp.clip(positive / jnp.clip(negative, 1.0, total), 1.0, total)
    bce = jnp.maximum(x, 0.0) - x * t + jnp.log1p(jnp.exp(-jnp.abs(x)))
    return jnp.mean((t * pos_w + not_t * neg_w) * bce)


if __name__ == "__main__":
    key = jax.random.PRNGKey(0)

    # (shape, bool_targets, kwargs) — small shapes exercising every code path:
    cases = [
        ((2, 4, 16, 16), False, {}),                          # single full block, float targets
        ((3, 5, 7), False, {}),                               # tiny input: pure-JAX tail path
        ((2, 9, 260), True, {}),                              # ragged tail + masked partial block + int8 targets
        ((4, 3, 64, 64), True, dict(max_rows=8, cores=2)),    # many blocks, even 2-slice split, int8
        ((3, 5, 64, 64), False, dict(max_rows=32, cores=2)),  # uneven split: clamp + compute skip
        ((2, 4, 96, 96), False, {}),                          # chunked inner loop + masked partial block
    ]
    for idx, (shape, bool_tgt, kw) in enumerate(cases):
        k_out, k_tgt = jax.random.split(jax.random.fold_in(key, idx))
        output = jax.random.normal(k_out, shape, dtype=jnp.float32)
        target = jax.random.bernoulli(k_tgt, p=0.2, shape=shape)
        if not bool_tgt:
            target = target.astype(jnp.float32)

        loss = jax.block_until_ready(
            negative_positive_balanced_bce_loss(output, target, **kw))
        ref = jax.block_until_ready(_reference_loss(output, target))
        assert jnp.allclose(loss, ref, rtol=1e-4, atol=1e-5), (shape, loss, ref)

    print("KERNEL_OK")
</pallas_src>

<mosaic_0001>
module attributes {stable_mosaic.version = 11 : i64} {
  func.func @kernel(%arg0: i32, %arg1: i32, %arg2: memref<16x128xf32, #tpu.memory_space<vmem>>, %arg3: memref<16x128xf32, #tpu.memory_space<vmem>>, %arg4: memref<1x8x128xf32, #tpu.memory_space<vmem>>, %arg5: memref<1x8x128xf32, #tpu.memory_space<vmem>>, %arg6: memref<1x8x128xf32, #tpu.memory_space<vmem>>) attributes {dimension_semantics = [#tpu.dimension_semantics<parallel>, #tpu.dimension_semantics<arbitrary>], iteration_bounds = array<i64: 1, 1>, scalar_prefetch = 0 : i64, scratch_operands = 0 : i64, tpu.core_type = #tpu.core_type<tc>, window_params = [{transform_indices = @transform_0, window_bounds = array<i64: 16, 128>}, {transform_indices = @transform_1, window_bounds = array<i64: 16, 128>}, {transform_indices = @transform_2, window_bounds = array<i64: 1, 8, 128>}, {transform_indices = @transform_3, window_bounds = array<i64: 1, 8, 128>}, {transform_indices = @transform_4, window_bounds = array<i64: 1, 8, 128>}]} {
    %c0_i32 = arith.constant 0 : i32
    %0 = arith.cmpi eq, %arg1, %c0_i32 : i32
    %1 = arith.extui %0 : i1 to i32
    %c0_i32_0 = arith.constant 0 : i32
    %2 = arith.cmpi ne, %1, %c0_i32_0 : i32
    scf.if %2 {
      %cst = arith.constant 0.000000e+00 : f32
      %15 = vector.broadcast %cst : f32 to vector<1x8x128xf32>
      %c0 = arith.constant 0 : index
      %c0_6 = arith.constant 0 : index
      %c0_7 = arith.constant 0 : index
      %16 = vector.load %arg4[%c0, %c0_6, %c0_7] : memref<1x8x128xf32, #tpu.memory_space<vmem>>, vector<1x8x128xf32>
      tpu.vector_store %arg4[%c0, %c0_6, %c0_7], %15 {strides = array<i32>} : memref<1x8x128xf32, #tpu.memory_space<vmem>>, vector<1x8x128xf32>,
      %cst_8 = arith.constant 0.000000e+00 : f32
      %17 = vector.broadcast %cst_8 : f32 to vector<1x8x128xf32>
      %c0_9 = arith.constant 0 : index
      %c0_10 = arith.constant 0 : index
      %c0_11 = arith.constant 0 : index
      %18 = vector.load %arg5[%c0_9, %c0_10, %c0_11] : memref<1x8x128xf32, #tpu.memory_space<vmem>>, vector<1x8x128xf32>
      tpu.vector_store %arg5[%c0_9, %c0_10, %c0_11], %17 {strides = array<i32>} : memref<1x8x128xf32, #tpu.memory_space<vmem>>, vector<1x8x128xf32>,
      %cst_12 = arith.constant 0.000000e+00 : f32
      %19 = vector.broadcast %cst_12 : f32 to vector<1x8x128xf32>
      %c0_13 = arith.constant 0 : index
      %c0_14 = arith.constant 0 : index
      %c0_15 = arith.constant 0 : index
      %20 = vector.load %arg6[%c0_13, %c0_14, %c0_15] : memref<1x8x128xf32, #tpu.memory_space<vmem>>, vector<1x8x128xf32>
      tpu.vector_store %arg6[%c0_13, %c0_14, %c0_15], %19 {strides = array<i32>} : memref<1x8x128xf32, #tpu.memory_space<vmem>>, vector<1x8x128xf32>,
    } else {
    }
    %c1_i32 = arith.constant 1 : i32
    %3 = arith.muli %arg0, %c1_i32 : i32
    %4 = arith.addi %3, %arg1 : i32
    %c16_i32 = arith.constant 16 : i32
    %5 = arith.muli %4, %c16_i32 : i32
    %c16_i32_1 = arith.constant 16 : i32
    %6 = arith.addi %5, %c16_i32_1 : i32
    %c16_i32_2 = arith.constant 16 : i32
    %7 = arith.cmpi sle, %6, %c16_i32_2 : i32
    %c16_i32_3 = arith.constant 16 : i32
    %8 = arith.cmpi slt, %5, %c16_i32_3 : i32
    %9 = arith.extui %7 : i1 to i32
    %c0_i32_4 = arith.constant 0 : i32
    %10 = arith.cmpi ne, %9, %c0_i32_4 : i32
    scf.if %10 {
      %c0_i32_6 = arith.constant 0 : i32
      %c1_i32_7 = arith.constant 1 : i32
      %15 = arith.muli %c0_i32_6, %c1_i32_7 : i32
      %c0_i32_8 = arith.constant 0 : i32
      %16 = arith.addi %c0_i32_8, %15 : i32
      %c16_i32_9 = arith.constant 16 : i32
      %17 = arith.muli %16, %c16_i32_9 : i32
      %18 = tpu.assume_multiple %17, 16 : i32
      %19 = arith.index_cast %18 : i32 to index
      %c0 = arith.constant 0 : index
      %20 = vector.load %arg2[%19, %c0] : memref<16x128xf32, #tpu.memory_space<vmem>>, vector<16x128xf32>
      %21 = arith.index_cast %18 : i32 to index
      %c0_10 = arith.constant 0 : index
      %22 = vector.load %arg3[%21, %c0_10] : memref<16x128xf32, #tpu.memory_space<vmem>>, vector<16x128xf32>
      %cst = arith.constant 0.000000e+00 : f32
      %23 = vector.broadcast %cst : f32 to vector<16x128xf32>
      %24 = arith.maximumf %20, %23 : vector<16x128xf32>
      %25 = arith.mulf %20, %22 : vector<16x128xf32>
      %26 = arith.subf %24, %25 : vector<16x128xf32>
      %27 = math.absf %20 : vector<16x128xf32>
      %cst_11 = arith.constant 0.000000e+00 : f32
      %28 = vector.broadcast %cst_11 : f32 to vector<16x128xf32>
      %29 = arith.subf %28, %27 : vector<16x128xf32>
      %30 = math.exp %29 : vector<16x128xf32>
      %31 = math.log1p %30 : vector<16x128xf32>
      %32 = arith.addf %26, %31 : vector<16x128xf32>
      %c0_12 = arith.constant 0 : index
      %c0_13 = arith.constant 0 : index
      %c0_14 = arith.constant 0 : index
      %33 = vector.load %arg4[%c0_12, %c0_13, %c0_14] : memref<1x8x128xf32, #tpu.memory_space<vmem>>, vector<1x8x128xf32>
      %34 = vector.shape_cast %33 : vector<1x8x128xf32> to vector<8x128xf32>
      %35 = vector.shape_cast %22 : vector<16x128xf32> to vector<2x8x128xf32>
      %cst_15 = arith.constant dense<0.000000e+00> : vector<8x128xf32>
      %36 = vector.multi_reduction <add>, %35, %cst_15 [0] : vector<2x8x128xf32> to vector<8x128xf32>
      %37 = arith.addf %34, %36 : vector<8x128xf32>
      %c0_16 = arith.constant 0 : index
      %c0_17 = arith.constant 0 : index
      %c0_18 = arith.constant 0 : index
      %38 = vector.load %arg4[%c0_16, %c0_17, %c0_18] : memref<1x8x128xf32, #tpu.memory_space<vmem>>, vector<1x8x128xf32>
      %39 = vector.shape_cast %38 : vector<1x8x128xf32> to vector<8x128xf32>
      %40 = vector.shape_cast %37 : vector<8x128xf32> to vector<1x8x128xf32>
      tpu.vector_store %arg4[%c0_16, %c0_17, %c0_18], %40 {strides = array<i32>} : memref<1x8x128xf32, #tpu.memory_space<vmem>>, vector<1x8x128xf32>,
      %c0_19 = arith.constant 0 : index
      %c0_20 = arith.constant 0 : index
      %c0_21 = arith.constant 0 : index
      %41 = vector.load %arg5[%c0_19, %c0_20, %c0_21] : memref<1x8x128xf32, #tpu.memory_space<vmem>>, vector<1x8x128xf32>
      %42 = vector.shape_cast %41 : vector<1x8x128xf32> to vector<8x128xf32>
      %43 = vector.shape_cast %32 : vector<16x128xf32> to vector<2x8x128xf32>
      %cst_22 = arith.constant dense<0.000000e+00> : vector<8x128xf32>
      %44 = vector.multi_reduction <add>, %43, %cst_22 [0] : vector<2x8x128xf32> to vector<8x128xf32>
      %45 = arith.addf %42, %44 : vector<8x128xf32>
      %c0_23 = arith.constant 0 : index
      %c0_24 = arith.constant 0 : index
      %c0_25 = arith.constant 0 : index
      %46 = vector.load %arg5[%c0_23, %c0_24, %c0_25] : memref<1x8x128xf32, #tpu.memory_space<vmem>>, vector<1x8x128xf32>
      %47 = vector.shape_cast %46 : vector<1x8x128xf32> to vector<8x128xf32>
      %48 = vector.shape_cast %45 : vector<8x128xf32> to vector<1x8x128xf32>
      tpu.vector_store %arg5[%c0_23, %c0_24, %c0_25], %48 {strides = array<i32>} : memref<1x8x128xf32, #tpu.memory_space<vmem>>, vector<1x8x128xf32>,
      %c0_26 = arith.constant 0 : index
      %c0_27 = arith.constant 0 : index
      %c0_28 = arith.constant 0 : index
      %49 = vector.load %arg6[%c0_26, %c0_27, %c0_28] : memref<1x8x128xf32, #tpu.memory_space<vmem>>, vector<1x8x128xf32>
      %50 = vector.shape_cast %49 : vector<1x8x128xf32> to vector<8x128xf32>
      %51 = arith.mulf %22, %32 : vector<16x128xf32>
      %52 = vector.shape_cast %51 : vector<16x128xf32> to vector<2x8x128xf32>
      %cst_29 = arith.constant dense<0.000000e+00> : vector<8x128xf32>
      %53 = vector.multi_reduction <add>, %52, %cst_29 [0] : vector<2x8x128xf32> to vector<8x128xf32>
      %54 = arith.addf %50, %53 : vector<8x128xf32>
      %c0_30 = arith.constant 0 : index
      %c0_31 = arith.constant 0 : index
      %c0_32 = arith.constant 0 : index
      %55 = vector.load %arg6[%c0_30, %c0_31, %c0_32] : memref<1x8x128xf32, #tpu.memory_space<vmem>>, vector<1x8x128xf32>
      %56 = vector.shape_cast %55 : vector<1x8x128xf32> to vector<8x128xf32>
      %57 = vector.shape_cast %54 : vector<8x128xf32> to vector<1x8x128xf32>
      tpu.vector_store %arg6[%c0_30, %c0_31, %c0_32], %57 {strides = array<i32>} : memref<1x8x128xf32, #tpu.memory_space<vmem>>, vector<1x8x128xf32>,
      %c1_i32_33 = arith.constant 1 : i32
    } else {
    }
    %true = arith.constant true
    %11 = arith.xori %7, %true : i1
    %12 = arith.andi %11, %8 : i1
    %13 = arith.extui %12 : i1 to i32
    %c0_i32_5 = arith.constant 0 : i32
    %14 = arith.cmpi ne, %13, %c0_i32_5 : i32
    scf.if %14 {
      %c0_i32_6 = arith.constant 0 : i32
      %c1_i32_7 = arith.constant 1 : i32
      %15 = arith.muli %c0_i32_6, %c1_i32_7 : i32
      %c0_i32_8 = arith.constant 0 : i32
      %16 = arith.addi %c0_i32_8, %15 : i32
      %c16_i32_9 = arith.constant 16 : i32
      %17 = arith.muli %16, %c16_i32_9 : i32
      %18 = tpu.assume_multiple %17, 16 : i32
      %19 = arith.index_cast %18 : i32 to index
      %c0 = arith.constant 0 : index
      %20 = vector.load %arg2[%19, %c0] : memref<16x128xf32, #tpu.memory_space<vmem>>, vector<16x128xf32>
      %21 = arith.index_cast %18 : i32 to index
      %c0_10 = arith.constant 0 : index
      %22 = vector.load %arg3[%21, %c0_10] : memref<16x128xf32, #tpu.memory_space<vmem>>, vector<16x128xf32>
      %23 = arith.addi %5, %18 : i32
      %24 = tpu.iota {dimensions = array<i32: 0>} : vector<16x128xi32>
      %25 = vector.broadcast %23 : i32 to vector<16x128xi32>
      %26 = arith.addi %25, %24 : vector<16x128xi32>
      %c16_i32_11 = arith.constant 16 : i32
      %27 = vector.broadcast %c16_i32_11 : i32 to vector<16x128xi32>
      %28 = arith.cmpi slt, %26, %27 : vector<16x128xi32>
      %cst = arith.constant 0.000000e+00 : f32
      %29 = vector.broadcast %cst : f32 to vector<16x128xf32>
      %30 = arith.select %28, %20, %29 : vector<16x128xi1>, vector<16x128xf32>
      %cst_12 = arith.constant 0.000000e+00 : f32
      %31 = vector.broadcast %cst_12 : f32 to vector<16x128xf32>
      %32 = arith.select %28, %22, %31 : vector<16x128xi1>, vector<16x128xf32>
      %cst_13 = arith.constant 0.000000e+00 : f32
      %33 = vector.broadcast %cst_13 : f32 to vector<16x128xf32>
      %34 = arith.maximumf %30, %33 : vector<16x128xf32>
      %35 = arith.mulf %30, %32 : vector<16x128xf32>
      %36 = arith.subf %34, %35 : vector<16x128xf32>
      %37 = math.absf %30 : vector<16x128xf32>
      %cst_14 = arith.constant 0.000000e+00 : f32
      %38 = vector.broadcast %cst_14 : f32 to vector<16x128xf32>
      %39 = arith.subf %38, %37 : vector<16x128xf32>
      %40 = math.exp %39 : vector<16x128xf32>
      %41 = math.log1p %40 : vector<16x128xf32>
      %42 = arith.addf %36, %41 : vector<16x128xf32>
      %cst_15 = arith.constant 0.000000e+00 : f32
      %43 = vector.broadcast %cst_15 : f32 to vector<16x128xf32>
      %44 = arith.select %28, %42, %43 : vector<16x128xi1>, vector<16x128xf32>
      %c0_16 = arith.constant 0 : index
      %c0_17 = arith.constant 0 : index
      %c0_18 = arith.constant 0 : index
      %45 = vector.load %arg4[%c0_16, %c0_17, %c0_18] : memref<1x8x128xf32, #tpu.memory_space<vmem>>, vector<1x8x128xf32>
      %46 = vector.shape_cast %45 : vector<1x8x128xf32> to vector<8x128xf32>
      %47 = vector.shape_cast %32 : vector<16x128xf32> to vector<2x8x128xf32>
      %cst_19 = arith.constant dense<0.000000e+00> : vector<8x128xf32>
      %48 = vector.multi_reduction <add>, %47, %cst_19 [0] : vector<2x8x128xf32> to vector<8x128xf32>
      %49 = arith.addf %46, %48 : vector<8x128xf32>
      %c0_20 = arith.constant 0 : index
      %c0_21 = arith.constant 0 : index
      %c0_22 = arith.constant 0 : index
      %50 = vector.load %arg4[%c0_20, %c0_21, %c0_22] : memref<1x8x128xf32, #tpu.memory_space<vmem>>, vector<1x8x128xf32>
      %51 = vector.shape_cast %50 : vector<1x8x128xf32> to vector<8x128xf32>
      %52 = vector.shape_cast %49 : vector<8x128xf32> to vector<1x8x128xf32>
      tpu.vector_store %arg4[%c0_20, %c0_21, %c0_22], %52 {strides = array<i32>} : memref<1x8x128xf32, #tpu.memory_space<vmem>>, vector<1x8x128xf32>,
      %c0_23 = arith.constant 0 : index
      %c0_24 = arith.constant 0 : index
      %c0_25 = arith.constant 0 : index
      %53 = vector.load %arg5[%c0_23, %c0_24, %c0_25] : memref<1x8x128xf32, #tpu.memory_space<vmem>>, vector<1x8x128xf32>
      %54 = vector.shape_cast %53 : vector<1x8x128xf32> to vector<8x128xf32>
      %55 = vector.shape_cast %44 : vector<16x128xf32> to vector<2x8x128xf32>
      %cst_26 = arith.constant dense<0.000000e+00> : vector<8x128xf32>
      %56 = vector.multi_reduction <add>, %55, %cst_26 [0] : vector<2x8x128xf32> to vector<8x128xf32>
      %57 = arith.addf %54, %56 : vector<8x128xf32>
      %c0_27 = arith.constant 0 : index
      %c0_28 = arith.constant 0 : index
      %c0_29 = arith.constant 0 : index
      %58 = vector.load %arg5[%c0_27, %c0_28, %c0_29] : memref<1x8x128xf32, #tpu.memory_space<vmem>>, vector<1x8x128xf32>
      %59 = vector.shape_cast %58 : vector<1x8x128xf32> to vector<8x128xf32>
      %60 = vector.shape_cast %57 : vector<8x128xf32> to vector<1x8x128xf32>
      tpu.vector_store %arg5[%c0_27, %c0_28, %c0_29], %60 {strides = array<i32>} : memref<1x8x128xf32, #tpu.memory_space<vmem>>, vector<1x8x128xf32>,
      %c0_30 = arith.constant 0 : index
      %c0_31 = arith.constant 0 : index
      %c0_32 = arith.constant 0 : index
      %61 = vector.load %arg6[%c0_30, %c0_31, %c0_32] : memref<1x8x128xf32, #tpu.memory_space<vmem>>, vector<1x8x128xf32>
      %62 = vector.shape_cast %61 : vector<1x8x128xf32> to vector<8x128xf32>
      %63 = arith.mulf %32, %44 : vector<16x128xf32>
      %64 = vector.shape_cast %63 : vector<16x128xf32> to vector<2x8x128xf32>
      %cst_33 = arith.constant dense<0.000000e+00> : vector<8x128xf32>
      %65 = vector.multi_reduction <add>, %64, %cst_33 [0] : vector<2x8x128xf32> to vector<8x128xf32>
      %66 = arith.addf %62, %65 : vector<8x128xf32>
      %c0_34 = arith.constant 0 : index
      %c0_35 = arith.constant 0 : index
      %c0_36 = arith.constant 0 : index
      %67 = vector.load %arg6[%c0_34, %c0_35, %c0_36] : memref<1x8x128xf32, #tpu.memory_space<vmem>>, vector<1x8x128xf32>
      %68 = vector.shape_cast %67 : vector<1x8x128xf32> to vector<8x128xf32>
      %69 = vector.shape_cast %66 : vector<8x128xf32> to vector<1x8x128xf32>
      tpu.vector_store %arg6[%c0_34, %c0_35, %c0_36], %69 {strides = array<i32>} : memref<1x8x128xf32, #tpu.memory_space<vmem>>, vector<1x8x128xf32>,
      %c1_i32_37 = arith.constant 1 : i32
    } else {
    }
    return
  }
  func.func @transform_0(%arg0: i32, %arg1: i32) -> (i32, i32) {
    %c1_i32 = arith.constant 1 : i32
    %0 = arith.muli %arg0, %c1_i32 : i32
    %1 = arith.addi %0, %arg1 : i32
    %c0_i32 = arith.constant 0 : i32
    %2 = arith.minsi %1, %c0_i32 : i32
    %c0_i32_0 = arith.constant 0 : i32
    %c0_i32_1 = arith.constant 0 : i32
    return %2, %c0_i32_0 : i32, i32
  }
  func.func @transform_1(%arg0: i32, %arg1: i32) -> (i32, i32) {
    %c1_i32 = arith.constant 1 : i32
    %0 = arith.muli %arg0, %c1_i32 : i32
    %1 = arith.addi %0, %arg1 : i32
    %c0_i32 = arith.constant 0 : i32
    %2 = arith.minsi %1, %c0_i32 : i32
    %c0_i32_0 = arith.constant 0 : i32
    %c0_i32_1 = arith.constant 0 : i32
    return %2, %c0_i32_0 : i32, i32
  }
  func.func @transform_2(%arg0: i32, %arg1: i32) -> (i32, i32, i32) {
    %c0_i32 = arith.constant 0 : i32
    %c0_i32_0 = arith.constant 0 : i32
    %c0_i32_1 = arith.constant 0 : i32
    return %arg0, %c0_i32, %c0_i32_0 : i32, i32, i32
  }
  func.func @transform_3(%arg0: i32, %arg1: i32) -> (i32, i32, i32) {
    %c0_i32 = arith.constant 0 : i32
    %c0_i32_0 = arith.constant 0 : i32
    %c0_i32_1 = arith.constant 0 : i32
    return %arg0, %c0_i32, %c0_i32_0 : i32, i32, i32
  }
  func.func @transform_4(%arg0: i32, %arg1: i32) -> (i32, i32, i32) {
    %c0_i32 = arith.constant 0 : i32
    %c0_i32_0 = arith.constant 0 : i32
    %c0_i32_1 = arith.constant 0 : i32
    return %arg0, %c0_i32, %c0_i32_0 : i32, i32, i32
  }
}

</mosaic_0001>

<bundles_post_ra>
// kernel: negative_positive_balanced_bce_loss.1
= control target key start
LH: loop header
LB: loop body
LE: loop exit
PB: predicated region body
PF: predicated region fallthrough
CT: control target
= control target key end

     0   :  { %s296_s0 = inlined_call_operand.vmem [shape: f32[16,128], index: 0, kind: input, shape index: {}]   ;;  %s297_s1 = inlined_call_operand.vmem [shape: f32[16,128], index: 1, kind: input, shape index: {}]   ;;  %s298_s2 = inlined_call_operand.vmem [shape: f32[1,8,128], index: 2, kind: output, shape index: {0}]   ;;  %s299_s3 = inlined_call_operand.vmem [shape: f32[1,8,128], index: 3, kind: output, shape index: {1}]   ;;  %s300_s4 = inlined_call_operand.vmem [shape: f32[1,8,128], index: 4, kind: output, shape index: {2}]  }
   0x1   :  { %v93_v0 = vld [vmem:[%s296_s0] sm:$0xff]  ;;  %v94_v1 = vld [vmem:[%s296_s0 + $0x8] sm:$0xff] }
   0x2   :  { %v95_v2 = vld [vmem:[%s297_s1] sm:$0xff]  ;;  %v96_v3 = vld [vmem:[%s297_s1 + $0x8] sm:$0xff]  ;;  %v103_v4 = vand.u32 2147483647, %v93_v0  ;;  %v104_v5 = vand.u32 2147483647, %v94_v1 }
   0x3   :  { %v132_v6 = vadd.f32 %v96_v3, %v95_v2  ;;  %v99_v18 = vmul.f32 %v95_v2, %v93_v0  ;;  %v97_v19 = vmax.f32 %v93_v0, 0.0  ;;  %v100_v22 = vmul.f32 %v96_v3, %v94_v1 }
   0x4   :  { %v105_v7 = vsub.f32 0.0, %v103_v4  ;;  %v106_v8 = vsub.f32 0.0, %v104_v5  ;;  %v98_v23 = vmax.f32 %v94_v1, 0.0 }
   0x5   :  { %134 = vst [vmem:[%s298_s2] sm:$0xff] %v132_v6  ;;  %v101_v27 = vsub.f32 %v97_v19, %v99_v18 }
   0x6   :  { %v107_v9 = vmul.f32 1.442695, %v105_v7  ;;  %v109_v10 = vmul.f32 1.442695, %v106_v8  ;;  %v102_v30 = vsub.f32 %v98_v23, %v100_v22 }
   0x8   :  { %242 = vpow2.f32 %v107_v9 }
   0x9   :  { %244 = vpow2.f32 %v109_v10 }
  0x15   :  { %v243_v11 = vpop.eup %242 }
  0x16   :  { %v245_v12 = vpop.eup %244  ;;  %v111_v13 = vadd.f32 1.0, %v243_v11  ;;  %v114_v15 = vmul.f32 -0.5, %v243_v11  ;;  %v117_v20 = vand.u32 2147483647, %v243_v11 }
  0x17   :  { %v120_v14 = vadd.f32 1.0, %v245_v12  ;;  %v123_v16 = vmul.f32 -0.5, %v245_v12  ;;  %v126_v24 = vand.u32 2147483647, %v245_v12 }
  0x18   :  { %246 = vlog2.f32 %v111_v13  ;;  %v115_v17 = vadd.f32 1.0, %v114_v15  ;;  %vm118_vm0 = vcmp.lt.f32.partialorder %v117_v20, 0.0004427343 }
  0x19   :  { %248 = vlog2.f32 %v120_v14  ;;  %v124_v21 = vadd.f32 1.0, %v123_v16  ;;  %vm127_vm1 = vcmp.lt.f32.partialorder %v126_v24, 0.0004427343 }
  0x1a   :  { %v116_v25 = vmul.f32 %v243_v11, %v115_v17 }
  0x1b   :  { %v125_v28 = vmul.f32 %v245_v12, %v124_v21 }
  0x25   :  { %v247_v26 = vpop.eup %246 }
  0x26   :  { %v249_v29 = vpop.eup %248  ;;  %v113_v31 = vmul.f32 0.6931472, %v247_v26 }
  0x27   :  { %v122_v32 = vmul.f32 0.6931472, %v249_v29 }
  0x28   :  { %v119_v33 = vsel %vm118_vm0, %v116_v25, %v113_v31 }
  0x29   :  { %v128_v34 = vsel %vm127_vm1, %v125_v28, %v122_v32  ;;  %v129_v35 = vadd.f32 %v119_v33, %v101_v27 }
  0x2a   :  { %v130_v36 = vadd.f32 %v128_v34, %v102_v30 }
  0x2b   :  { %v140_v37 = vmul.f32 %v129_v35, %v95_v2 }
  0x2c   :  { %v136_v38 = vadd.f32 %v130_v36, %v129_v35  ;;  %v141_v39 = vmul.f32 %v130_v36, %v96_v3 }
  0x2e   :  { %v142_v40 = vadd.f32 %v141_v39, %v140_v37  ;;  %138 = vst [vmem:[%s299_s3] sm:$0xff] %v136_v38 }
  0x30   :  { %144 = vst [vmem:[%s300_s4] sm:$0xff] %v142_v40 }

</bundles_post_ra>
